<compile_context>
chip_gen: v5e
topology: v5e:2x2
jax: 0.10.0
libtpu: 0.0.40
codegen_flags: <defaults>
</compile_context>

<pallas_src>
import jax
import jax.numpy as jnp
from jax.experimental import pallas as pl
from jax.experimental.pallas import tpu as pltpu

HIDDEN = 128
OUT = 10
OUT_PAD = 128  # lane-dense (multiple-of-128) padded output width


def _round_up(x, m):
    return ((x + m - 1) // m) * m


# ---------------------------------------------------------------------------
# Fused kernel: W1 resident in VMEM, one grid step per batch tile.
# ---------------------------------------------------------------------------
def _fused_kernel(x_ref, w1_ref, b1_ref, w2_ref, b2_ref, o_ref):
    # fc1: full-Din contraction on the MXU, f32 accumulation; bias + ReLU.
    h = jnp.dot(x_ref[...], w1_ref[...], preferred_element_type=jnp.float32)
    h = jnp.maximum(h + b1_ref[...], 0.0)
    # fc2: 128 padded output lanes -> full-width MXU tile and unmasked store.
    y = jnp.dot(h.astype(w2_ref.dtype), w2_ref[...],
                preferred_element_type=jnp.float32)
    o_ref[...] = (y + b2_ref[...]).astype(o_ref.dtype)


# ---------------------------------------------------------------------------
# K-tiled fallback for very large input_size (W1 not VMEM-resident).
# ---------------------------------------------------------------------------
def _ktiled_kernel(x_ref, w1_ref, b1_ref, w2_ref, b2_ref, o_ref, acc_ref):
    k = pl.program_id(1)

    @pl.when(k == 0)
    def _():
        acc_ref[...] = jnp.zeros_like(acc_ref)

    acc_ref[...] += jnp.dot(x_ref[...], w1_ref[...],
                            preferred_element_type=jnp.float32)

    @pl.when(k == pl.num_programs(1) - 1)
    def _():
        h = jnp.maximum(acc_ref[...] + b1_ref[...], 0.0)
        y = jnp.dot(h.astype(w2_ref.dtype), w2_ref[...],
                    preferred_element_type=jnp.float32)
        o_ref[...] = (y + b2_ref[...]).astype(o_ref.dtype)


def emg_classifier_forward(x, w1, b1, w2, b2, *, use_bf16=False,
                           force_k_tiled=False, tk=512,
                           max_resident_w1_bytes=24 * 1024 * 1024):
    """Forward pass. x: (..., Din) -> (B, 10) float32.

    use_bf16: cast x/W1/W2 operands to bfloat16 (f32 accumulation) — the
              recommended setting on v6e/v7x; keep False on v5e.
    """
    Din = w1.shape[0]
    x = x.reshape(-1, Din)  # mirrors x.view(-1, in_features)
    B = x.shape[0]

    # Batch tile: fill the MXU rows (up to 256) and pad the batch so any B works.
    B8 = _round_up(max(B, 1), 8)
    tb = min(256, B8)
    B_pad = _round_up(B8, tb)
    if B_pad != B:
        x = jnp.pad(x, ((0, B_pad - B), (0, 0)))

    # Lane-dense fc2: pad 10 -> 128 output columns with zeros.
    w2p = jnp.pad(w2, ((0, 0), (0, OUT_PAD - OUT)))
    b2p = jnp.pad(b2, (0, OUT_PAD - OUT)).reshape(1, OUT_PAD).astype(jnp.float32)
    b1_2d = b1.reshape(1, HIDDEN).astype(jnp.float32)

    op_dtype = jnp.bfloat16 if use_bf16 else jnp.float32
    x_c = x.astype(op_dtype)
    w1_c = w1.astype(op_dtype)
    w2_c = w2p.astype(op_dtype)

    # W1 is double-buffered by the BlockSpec pipeline -> 2x its bytes in VMEM.
    w1_bytes = Din * HIDDEN * jnp.dtype(op_dtype).itemsize
    resident = (2 * w1_bytes) <= max_resident_w1_bytes

    if resident and not force_k_tiled:
        grid = (B_pad // tb,)
        out = pl.pallas_call(
            _fused_kernel,
            out_shape=jax.ShapeDtypeStruct((B_pad, OUT_PAD), jnp.float32),
            grid_spec=pltpu.PrefetchScalarGridSpec(
                num_scalar_prefetch=0,
                grid=grid,
                in_specs=[
                    pl.BlockSpec((tb, Din), lambda i: (i, 0)),         # x tile
                    pl.BlockSpec((Din, HIDDEN), lambda i: (0, 0)),     # W1 (resident)
                    pl.BlockSpec((1, HIDDEN), lambda i: (0, 0)),       # b1
                    pl.BlockSpec((HIDDEN, OUT_PAD), lambda i: (0, 0)), # W2 (padded)
                    pl.BlockSpec((1, OUT_PAD), lambda i: (0, 0)),      # b2 (padded)
                ],
                out_specs=pl.BlockSpec((tb, OUT_PAD), lambda i: (i, 0)),
            ),
            compiler_params=pltpu.CompilerParams(
                dimension_semantics=("parallel",),
            ),
        )(x_c, w1_c, b1_2d, w2_c, b2p)
    else:
        # K-tiled path for huge Din (e.g. input_size=50000). Zero-pad Din to tk.
        Din_pad = _round_up(Din, tk)
        if Din_pad != Din:
            x_c = jnp.pad(x_c, ((0, 0), (0, Din_pad - Din)))
            w1_c = jnp.pad(w1_c, ((0, Din_pad - Din), (0, 0)))
        grid = (B_pad // tb, Din_pad // tk)
        out = pl.pallas_call(
            _ktiled_kernel,
            out_shape=jax.ShapeDtypeStruct((B_pad, OUT_PAD), jnp.float32),
            grid_spec=pltpu.PrefetchScalarGridSpec(
                num_scalar_prefetch=0,
                grid=grid,
                in_specs=[
                    pl.BlockSpec((tb, tk), lambda i, k: (i, k)),           # x tile
                    pl.BlockSpec((tk, HIDDEN), lambda i, k: (k, 0)),       # W1 tile
                    pl.BlockSpec((1, HIDDEN), lambda i, k: (0, 0)),        # b1
                    pl.BlockSpec((HIDDEN, OUT_PAD), lambda i, k: (0, 0)),  # W2 (padded)
                    pl.BlockSpec((1, OUT_PAD), lambda i, k: (0, 0)),       # b2 (padded)
                ],
                out_specs=pl.BlockSpec((tb, OUT_PAD), lambda i, k: (i, 0)),
                scratch_shapes=[pltpu.VMEM((tb, HIDDEN), jnp.float32)],
            ),
            compiler_params=pltpu.CompilerParams(
                dimension_semantics=("parallel", "arbitrary"),
            ),
        )(x_c, w1_c, b1_2d, w2_c, b2p)

    return out[:B, :OUT]


def init_params(key, input_size):
    """PyTorch-default-style init: U(-1/sqrt(fan_in), 1/sqrt(fan_in))."""
    k1, k2, k3, k4 = jax.random.split(key, 4)
    lim1 = 1.0 / jnp.sqrt(jnp.float32(input_size))
    lim2 = 1.0 / jnp.sqrt(jnp.float32(HIDDEN))
    w1 = jax.random.uniform(k1, (input_size, HIDDEN), jnp.float32, -lim1, lim1)
    b1 = jax.random.uniform(k2, (HIDDEN,), jnp.float32, -lim1, lim1)
    w2 = jax.random.uniform(k3, (HIDDEN, OUT), jnp.float32, -lim2, lim2)
    b2 = jax.random.uniform(k4, (OUT,), jnp.float32, -lim2, lim2)
    return w1, b1, w2, b2


def reference_forward(x, w1, b1, w2, b2):
    x = x.reshape(-1, w1.shape[0])
    h = jnp.maximum(x @ w1 + b1, 0.0)
    return h @ w2 + b2


if __name__ == "__main__":
    # Small shapes consistent with the module structure (input_size scaled down).
    INPUT_SIZE = 512
    BATCH = 8

    key = jax.random.PRNGKey(0)
    kx, kp = jax.random.split(key)
    x = jax.random.normal(kx, (BATCH, INPUT_SIZE), jnp.float32)
    w1, b1, w2, b2 = init_params(kp, INPUT_SIZE)
    ref = reference_forward(x, w1, b1, w2, b2)

    # 1) Fused single-step kernel (f32 operands) — tight check.
    out = jax.block_until_ready(emg_classifier_forward(x, w1, b1, w2, b2))
    assert out.shape == (BATCH, OUT)
    assert jnp.allclose(out, ref, atol=1e-4, rtol=1e-4), "f32 fused mismatch"

    # 2) Fused kernel with bf16 operands (v6e/v7x fast path) — loose check.
    out_bf16 = jax.block_until_ready(
        emg_classifier_forward(x, w1, b1, w2, b2, use_bf16=True))
    assert jnp.allclose(out_bf16, ref, atol=5e-2, rtol=5e-2), "bf16 fused mismatch"

    # 3) K-tiled fallback path (as used for very large input_size) — tight check.
    out_kt = jax.block_until_ready(
        emg_classifier_forward(x, w1, b1, w2, b2, force_k_tiled=True, tk=128))
    assert jnp.allclose(out_kt, ref, atol=1e-4, rtol=1e-4), "k-tiled mismatch"

    # 4) Non-multiple-of-8 batch exercises the batch padding (view(-1, Din) generality).
    out_odd = jax.block_until_ready(
        emg_classifier_forward(x[:5], w1, b1, w2, b2))
    assert out_odd.shape == (5, OUT)
    assert jnp.allclose(out_odd, ref[:5], atol=1e-4, rtol=1e-4), "odd-batch mismatch"

    print("KERNEL_OK")
</pallas_src>

<mosaic_0001>
module attributes {stable_mosaic.version = 11 : i64} {
  func.func @_fused_kernel(%arg0: i32, %arg1: memref<8x512xf32, #tpu.memory_space<vmem>>, %arg2: memref<512x128xf32, #tpu.memory_space<vmem>>, %arg3: memref<1x128xf32, #tpu.memory_space<vmem>>, %arg4: memref<128x128xf32, #tpu.memory_space<vmem>>, %arg5: memref<1x128xf32, #tpu.memory_space<vmem>>, %arg6: memref<8x128xf32, #tpu.memory_space<vmem>>) attributes {dimension_semantics = [#tpu.dimension_semantics<parallel>], iteration_bounds = array<i64: 1>, scalar_prefetch = 0 : i64, scratch_operands = 0 : i64, tpu.core_type = #tpu.core_type<tc>, window_params = [{transform_indices = @transform_0, window_bounds = array<i64: 8, 512>}, {pipeline_mode = #tpu.pipeline_mode<synchronous>, transform_indices = @transform_1, window_bounds = array<i64: 512, 128>}, {pipeline_mode = #tpu.pipeline_mode<synchronous>, transform_indices = @transform_2, window_bounds = array<i64: 1, 128>}, {pipeline_mode = #tpu.pipeline_mode<synchronous>, transform_indices = @transform_3, window_bounds = array<i64: 128, 128>}, {pipeline_mode = #tpu.pipeline_mode<synchronous>, transform_indices = @transform_4, window_bounds = array<i64: 1, 128>}, {transform_indices = @transform_5, window_bounds = array<i64: 8, 128>}]} {
    %c0 = arith.constant 0 : index
    %c0_0 = arith.constant 0 : index
    %0 = vector.load %arg1[%c0, %c0_0] : memref<8x512xf32, #tpu.memory_space<vmem>>, vector<8x512xf32>
    %c0_1 = arith.constant 0 : index
    %c0_2 = arith.constant 0 : index
    %1 = vector.load %arg2[%c0_1, %c0_2] : memref<512x128xf32, #tpu.memory_space<vmem>>, vector<512x128xf32>
    %cst = arith.constant dense<0.000000e+00> : vector<8x128xf32>
    %2 = tpu.matmul %0, %1, %cst {dimension_numbers = #tpu.dot_dimension_numbers<[1], [0], [0], [1], [0, 0, 1, 1], [], []>} : vector<8x512xf32>, vector<512x128xf32>, vector<8x128xf32> -> vector<8x128xf32>
    %c0_3 = arith.constant 0 : index
    %c0_4 = arith.constant 0 : index
    %3 = vector.load %arg3[%c0_3, %c0_4] : memref<1x128xf32, #tpu.memory_space<vmem>>, vector<1x128xf32>
    %4 = vector.broadcast %3 : vector<1x128xf32> to vector<8x128xf32>
    %5 = arith.addf %2, %4 : vector<8x128xf32>
    %cst_5 = arith.constant 0.000000e+00 : f32
    %6 = vector.broadcast %cst_5 : f32 to vector<8x128xf32>
    %7 = arith.maximumf %5, %6 : vector<8x128xf32>
    %c0_6 = arith.constant 0 : index
    %c0_7 = arith.constant 0 : index
    %8 = vector.load %arg4[%c0_6, %c0_7] : memref<128x128xf32, #tpu.memory_space<vmem>>, vector<128x128xf32>
    %cst_8 = arith.constant dense<0.000000e+00> : vector<8x128xf32>
    %9 = tpu.matmul %7, %8, %cst_8 {dimension_numbers = #tpu.dot_dimension_numbers<[1], [0], [0], [1], [0, 0, 1, 1], [], []>} : vector<8x128xf32>, vector<128x128xf32>, vector<8x128xf32> -> vector<8x128xf32>
    %c0_9 = arith.constant 0 : index
    %c0_10 = arith.constant 0 : index
    %10 = vector.load %arg5[%c0_9, %c0_10] : memref<1x128xf32, #tpu.memory_space<vmem>>, vector<1x128xf32>
    %11 = vector.broadcast %10 : vector<1x128xf32> to vector<8x128xf32>
    %12 = arith.addf %9, %11 : vector<8x128xf32>
    %c0_11 = arith.constant 0 : index
    %c0_12 = arith.constant 0 : index
    %13 = vector.load %arg6[%c0_11, %c0_12] : memref<8x128xf32, #tpu.memory_space<vmem>>, vector<8x128xf32>
    tpu.vector_store %arg6[%c0_11, %c0_12], %12 {strides = array<i32>} : memref<8x128xf32, #tpu.memory_space<vmem>>, vector<8x128xf32>,
    return
  }
  func.func @transform_0(%arg0: i32) -> (i32, i32) {
    %c0_i32 = arith.constant 0 : i32
    %c0_i32_0 = arith.constant 0 : i32
    return %arg0, %c0_i32 : i32, i32
  }
  func.func @transform_1(%arg0: i32) -> (i32, i32) {
    %c0_i32 = arith.constant 0 : i32
    %c0_i32_0 = arith.constant 0 : i32
    %c0_i32_1 = arith.constant 0 : i32
    return %c0_i32, %c0_i32_0 : i32, i32
  }
  func.func @transform_2(%arg0: i32) -> (i32, i32) {
    %c0_i32 = arith.constant 0 : i32
    %c0_i32_0 = arith.constant 0 : i32
    %c0_i32_1 = arith.constant 0 : i32
    return %c0_i32, %c0_i32_0 : i32, i32
  }
  func.func @transform_3(%arg0: i32) -> (i32, i32) {
    %c0_i32 = arith.constant 0 : i32
    %c0_i32_0 = arith.constant 0 : i32
    %c0_i32_1 = arith.constant 0 : i32
    return %c0_i32, %c0_i32_0 : i32, i32
  }
  func.func @transform_4(%arg0: i32) -> (i32, i32) {
    %c0_i32 = arith.constant 0 : i32
    %c0_i32_0 = arith.constant 0 : i32
    %c0_i32_1 = arith.constant 0 : i32
    return %c0_i32, %c0_i32_0 : i32, i32
  }
  func.func @transform_5(%arg0: i32) -> (i32, i32) {
    %c0_i32 = arith.constant 0 : i32
    %c0_i32_0 = arith.constant 0 : i32
    return %arg0, %c0_i32 : i32, i32
  }
}

</mosaic_0001>

<bundles_post_ra>
// kernel: tpu_custom_call.1
= control target key start
LH: loop header
LB: loop body
LE: loop exit
PB: predicated region body
PF: predicated region fallthrough
CT: control target
= control target key end

     0   :  { %10 = vsyncpa [#allocation3], 0  ;;  %s442_s0 = inlined_call_operand.hbm [shape: f32[8,512], index: 0, kind: input, shape index: {}]   ;;  %s443_s1 = inlined_call_operand.hbm [shape: f32[512,128], index: 1, kind: input, shape index: {}]   ;;  %s444_s2 = inlined_call_operand.vmem [shape: f32[1,128], index: 2, kind: input, shape index: {}]   ;;  %s445_s3 = inlined_call_operand.hbm [shape: f32[128,128], index: 3, kind: input, shape index: {}]   ;;  %s446_s4 = inlined_call_operand.vmem [shape: f32[1,128], index: 4, kind: input, shape index: {}]   ;;  %s447_s5 = inlined_call_operand.hbm [shape: f32[8,128], index: 5, kind: output, shape index: {}]  }
   0x1   :  { %11 = vsyncpa [#allocation6], 0  ;;  %s28_s20 = sshll.u32 %s443_s1, 4  ;;  %s29_s20 = int_to_ptr.hbm [resolvable:$true] %s28_s20 }
   0x2   :  { %12 = vsyncpa [#allocation4], 0  ;;  %s388_s21 = smov [#allocation5]   ;;  %s18_s25 = sshll.u32 %s442_s0, 4  ;;  %s19_s25 = int_to_ptr.hbm [resolvable:$true] %s18_s25 }
   0x3   :  { %s30_s22 = sshll.u32 %s388_s21, 4  ;;  %s389_s26 = smov 128   ;;  %s31_s22 = int_to_ptr.vmem [resolvable:$true] %s30_s22 }
   0x4   :  { %s390_s27 = smov 8   ;;  %s391_s28 = smov [#allocation2]  }
   0x5   :  { %36 = dma.hbm_to_vmem [thread:$0]  %s29_s20, 8192, %s31_s22, [#allocation6], %s389_s26, %s389_s26, %s390_s27  }
   0x6   :  { %s20_s29 = sshll.u32 %s391_s28, 4  ;;  %s43_s7 = sshll.u32 %s445_s3, 4  ;;  %s21_s29 = int_to_ptr.vmem [resolvable:$true] %s20_s29  ;;  %s44_s7 = int_to_ptr.hbm [resolvable:$true] %s43_s7 }
   0x7   :  { %23 = dma.hbm_to_vmem [thread:$0]  %s19_s25, 512, %s21_s29, [#allocation3]  }
   0x8   :  { %s392_s1 = smov [#allocation7]  }
   0x9   :  { %s45_s8 = sshll.u32 %s392_s1, 4  ;;  %s46_s8 = int_to_ptr.vmem [resolvable:$true] %s45_s8 }
   0xa   :  { %51 = dma.hbm_to_vmem [thread:$0]  %s44_s7, 2048, %s46_s8, [#allocation6], %s389_s26, %s389_s26, %s390_s27  }
   0xb   :  { %382 = dma.done.wait [#allocation3], 512  }
   0xc   :  { %383 = vsyncadd [#allocation3], 4294966784 }
   0xd   :  { %384 = dma.done.wait [#allocation6], 10240  }
   0xe   :  { %385 = vsyncadd [#allocation6], 4294957056  ;;  %v117_v0 = vld [vmem:[#allocation5 + $0x178] sm:$0xff]  ;;  %v116_v2 = vld [vmem:[#allocation5 + $0x170] sm:$0xff]  ;;  %s393_s11 = smov [#allocation8]  }
   0xf   :  { %v85_v1 = vld [vmem:[#allocation5 + $0x78] sm:$0xff]  ;;  %178 = vmatpush.msra.mxu2 %v117_v0  ;;  %v84_v4 = vld [vmem:[#allocation5 + $0x70] sm:$0xff]  ;;  %v115_v6 = vld [vmem:[#allocation5 + $0x168] sm:$0xff]  ;;  %s265_s12 = sshll.u32 %s393_s11, 4  ;;  %s266_s12 = int_to_ptr.vmem [resolvable:$true] %s265_s12 }
  0x10   :  { %138 = vmatpush.msra.mxu0 %v85_v1  ;;  %v133_v3 = vld [vmem:[#allocation5 + $0x1f8] sm:$0xff]  ;;  %v132_v7 = vld [vmem:[#allocation5 + $0x1f0] sm:$0xff]  ;;  %v83_v8 = vld [vmem:[#allocation5 + $0x68] sm:$0xff] }
  0x11   :  { %v101_v5 = vld [vmem:[#allocation5 + $0xf8] sm:$0xff]  ;;  %198 = vmatpush.msra.mxu3 %v133_v3  ;;  %179 = vmatpush.msra.mxu2 %v116_v2  ;;  %v100_v9 = vld [vmem:[#allocation5 + $0xf0] sm:$0xff]  ;;  %v131_v10 = vld [vmem:[#allocation5 + $0x1e8] sm:$0xff] }
  0x12   :  { %158 = vmatpush.msra.mxu1 %v101_v5  ;;  %139 = vmatpush.msra.mxu0 %v84_v4  ;;  %v114_v11 = vld [vmem:[#allocation5 + $0x160] sm:$0xff]  ;;  %v99_v13 = vld [vmem:[#allocation5 + $0xe8] sm:$0xff]  ;;  %v113_v16 = vld [vmem:[#allocation5 + $0x158] sm:$0xff] }
  0x13   :  { %199 = vmatpush.msra.mxu3 %v132_v7  ;;  %v82_v12 = vld [vmem:[#allocation5 + $0x60] sm:$0xff]  ;;  %180 = vmatpush.msra.mxu2 %v115_v6  ;;  %v81_v17 = vld [vmem:[#allocation5 + $0x58] sm:$0xff]  ;;  %v112_v20 = vld [vmem:[#allocation5 + $0x150] sm:$0xff] }
  0x14   :  { %159 = vmatpush.msra.mxu1 %v100_v9  ;;  %140 = vmatpush.msra.mxu0 %v83_v8  ;;  %v130_v14 = vld [vmem:[#allocation5 + $0x1e0] sm:$0xff]  ;;  %v129_v18 = vld [vmem:[#allocation5 + $0x1d8] sm:$0xff]  ;;  %v80_v21 = vld [vmem:[#allocation5 + $0x50] sm:$0xff] }
  0x15   :  { %v98_v15 = vld [vmem:[#allocation5 + $0xe0] sm:$0xff]  ;;  %200 = vmatpush.msra.mxu3 %v131_v10  ;;  %181 = vmatpush.msra.mxu2 %v114_v11  ;;  %v97_v19 = vld [vmem:[#allocation5 + $0xd8] sm:$0xff]  ;;  %v128_v22 = vld [vmem:[#allocation5 + $0x1d0] sm:$0xff] }
  0x16   :  { %160 = vmatpush.msra.mxu1 %v99_v13  ;;  %141 = vmatpush.msra.mxu0 %v82_v12  ;;  %v96_v23 = vld [vmem:[#allocation5 + $0xd0] sm:$0xff]  ;;  %v111_v24 = vld [vmem:[#allocation5 + $0x148] sm:$0xff]  ;;  %v110_v28 = vld [vmem:[#allocation5 + $0x140] sm:$0xff] }
  0x17   :  { %201 = vmatpush.msra.mxu3 %v130_v14  ;;  %182 = vmatpush.msra.mxu2 %v113_v16  ;;  %v79_v25 = vld [vmem:[#allocation5 + $0x48] sm:$0xff]  ;;  %v78_v29 = vld [vmem:[#allocation5 + $0x40] sm:$0xff]  ;;  %v109_v32 = vld [vmem:[#allocation5 + $0x138] sm:$0xff] }
  0x18   :  { %161 = vmatpush.msra.mxu1 %v98_v15  ;;  %142 = vmatpush.msra.mxu0 %v81_v17  ;;  %v127_v26 = vld [vmem:[#allocation5 + $0x1c8] sm:$0xff]  ;;  %v126_v30 = vld [vmem:[#allocation5 + $0x1c0] sm:$0xff]  ;;  %v77_v33 = vld [vmem:[#allocation5 + $0x38] sm:$0xff] }
  0x19   :  { %202 = vmatpush.msra.mxu3 %v129_v18  ;;  %183 = vmatpush.msra.mxu2 %v112_v20  ;;  %v95_v27 = vld [vmem:[#allocation5 + $0xc8] sm:$0xff]  ;;  %v94_v31 = vld [vmem:[#allocation5 + $0xc0] sm:$0xff]  ;;  %v125_v34 = vld [vmem:[#allocation5 + $0x1b8] sm:$0xff] }
  0x1a   :  { %162 = vmatpush.msra.mxu1 %v97_v19  ;;  %143 = vmatpush.msra.mxu0 %v80_v21  ;;  %v93_v35 = vld [vmem:[#allocation5 + $0xb8] sm:$0xff]  ;;  %v108_v36 = vld [vmem:[#allocation5 + $0x130] sm:$0xff]  ;;  %v107_v40 = vld [vmem:[#allocation5 + $0x128] sm:$0xff] }
  0x1b   :  { %203 = vmatpush.msra.mxu3 %v128_v22  ;;  %184 = vmatpush.msra.mxu2 %v111_v24  ;;  %v76_v37 = vld [vmem:[#allocation5 + $0x30] sm:$0xff]  ;;  %v75_v41 = vld [vmem:[#allocation5 + $0x28] sm:$0xff]  ;;  %v106_v44 = vld [vmem:[#allocation5 + $0x120] sm:$0xff] }
  0x1c   :  { %163 = vmatpush.msra.mxu1 %v96_v23  ;;  %144 = vmatpush.msra.mxu0 %v79_v25  ;;  %v124_v38 = vld [vmem:[#allocation5 + $0x1b0] sm:$0xff]  ;;  %v123_v42 = vld [vmem:[#allocation5 + $0x1a8] sm:$0xff]  ;;  %v74_v45 = vld [vmem:[#allocation5 + $0x20] sm:$0xff] }
  0x1d   :  { %204 = vmatpush.msra.mxu3 %v127_v26  ;;  %185 = vmatpush.msra.mxu2 %v110_v28  ;;  %v92_v39 = vld [vmem:[#allocation5 + $0xb0] sm:$0xff]  ;;  %v91_v43 = vld [vmem:[#allocation5 + $0xa8] sm:$0xff]  ;;  %v122_v46 = vld [vmem:[#allocation5 + $0x1a0] sm:$0xff] }
  0x1e   :  { %164 = vmatpush.msra.mxu1 %v95_v27  ;;  %145 = vmatpush.msra.mxu0 %v78_v29  ;;  %v90_v47 = vld [vmem:[#allocation5 + $0xa0] sm:$0xff]  ;;  %v105_v48 = vld [vmem:[#allocation5 + $0x118] sm:$0xff]  ;;  %v104_v52 = vld [vmem:[#allocation5 + $0x110] sm:$0xff] }
  0x1f   :  { %205 = vmatpush.msra.mxu3 %v126_v30  ;;  %186 = vmatpush.msra.mxu2 %v109_v32  ;;  %v73_v49 = vld [vmem:[#allocation5 + $0x18] sm:$0xff]  ;;  %v72_v53 = vld [vmem:[#allocation5 + $0x10] sm:$0xff]  ;;  %v103_v54 = vld [vmem:[#allocation5 + $0x108] sm:$0xff] }
  0x20   :  { %165 = vmatpush.msra.mxu1 %v94_v31  ;;  %146 = vmatpush.msra.mxu0 %v77_v33  ;;  %v121_v50 = vld [vmem:[#allocation5 + $0x198] sm:$0xff]  ;;  %v120_v55 = vld [vmem:[#allocation5 + $0x190] sm:$0xff]  ;;  %v71_v57 = vld [vmem:[#allocation5 + $0x8] sm:$0xff] }
  0x21   :  { %206 = vmatpush.msra.mxu3 %v125_v34  ;;  %187 = vmatpush.msra.mxu2 %v108_v36  ;;  %v89_v51 = vld [vmem:[#allocation5 + $0x98] sm:$0xff]  ;;  %v88_v56 = vld [vmem:[#allocation5 + $0x90] sm:$0xff]  ;;  %v119_v58 = vld [vmem:[#allocation5 + $0x188] sm:$0xff] }
  0x22   :  { %166 = vmatpush.msra.mxu1 %v93_v35  ;;  %147 = vmatpush.msra.mxu0 %v76_v37  ;;  %v87_v59 = vld [vmem:[#allocation5 + $0x88] sm:$0xff]  ;;  %v102_v60 = vld [vmem:[#allocation5 + $0x100] sm:$0xff]  ;;  %v68_v62 = vld [vmem:[#allocation2 + $0x10] sm:$0xff] }
  0x23   :  { %207 = vmatpush.msra.mxu3 %v124_v38  ;;  %188 = vmatpush.msra.mxu2 %v107_v40  ;;  %v70_v61 = vld [vmem:[#allocation5] sm:$0xff]  ;;  %v69_v1 = vld [vmem:[#allocation2 + $0x18] sm:$0xff]  ;;  %v67_v4 = vld [vmem:[#allocation2 + $0x8] sm:$0xff] }
  0x24   :  { %167 = vmatpush.msra.mxu1 %v92_v39  ;;  %148 = vmatpush.msra.mxu0 %v75_v41  ;;  %v118_v63 = vld [vmem:[#allocation5 + $0x180] sm:$0xff]  ;;  %v234_v3 = vld [vmem:[#allocation7 + $0x78] sm:$0xff]  ;;  %v233_v5 = vld [vmem:[#allocation7 + $0x70] sm:$0xff] }
  0x25   :  { %208 = vmatpush.msra.mxu3 %v123_v42  ;;  %189 = vmatpush.msra.mxu2 %v106_v44  ;;  %v66_v0 = vld [vmem:[#allocation2] sm:$0xff]  ;;  %v232_v6 = vld [vmem:[#allocation7 + $0x68] sm:$0xff]  ;;  %v230_v8 = vld [vmem:[#allocation7 + $0x58] sm:$0xff] }
  0x26   :  { %168 = vmatpush.msra.mxu1 %v91_v43  ;;  %149 = vmatpush.msra.mxu0 %v74_v45  ;;  %v86_v2 = vld [vmem:[#allocation5 + $0x80] sm:$0xff]  ;;  %v229_v9 = vld [vmem:[#allocation7 + $0x50] sm:$0xff]  ;;  %v228_v10 = vld [vmem:[#allocation7 + $0x48] sm:$0xff] }
  0x27   :  { %209 = vmatpush.msra.mxu3 %v122_v46  ;;  %190 = vmatpush.msra.mxu2 %v105_v48  ;;  %v231_v7 = vld [vmem:[#allocation7 + $0x60] sm:$0xff]  ;;  %v226_v12 = vld [vmem:[#allocation7 + $0x38] sm:$0xff]  ;;  %v225_v13 = vld [vmem:[#allocation7 + $0x30] sm:$0xff] }
  0x28   :  { %169 = vmatpush.msra.mxu1 %v90_v47  ;;  %150 = vmatpush.msra.mxu0 %v73_v49  ;;  %v227_v11 = vld [vmem:[#allocation7 + $0x40] sm:$0xff]  ;;  %v224_v14 = vld [vmem:[#allocation7 + $0x28] sm:$0xff]  ;;  %v222_v16 = vld [vmem:[#allocation7 + $0x18] sm:$0xff] }
  0x29   :  { %210 = vmatpush.msra.mxu3 %v121_v50  ;;  %191 = vmatpush.msra.mxu2 %v104_v52  ;;  %v223_v15 = vld [vmem:[#allocation7 + $0x20] sm:$0xff]  ;;  %v221_v17 = vld [vmem:[#allocation7 + $0x10] sm:$0xff]  ;;  %v220_v18 = vld [vmem:[#allocation7 + $0x8] sm:$0xff] }
  0x2a   :  { %170 = vmatpush.msra.mxu1 %v89_v51  ;;  %151 = vmatpush.msra.mxu0 %v72_v53  ;;  %v219_v19 = vld [vmem:[#allocation7] sm:$0xff] }
  0x2b   :  { %211 = vmatpush.msra.mxu3 %v120_v55  ;;  %192 = vmatpush.msra.mxu2 %v103_v54  ;;  %v284_v20 = vld [vmem:[%s444_s2] ss:$0 sm:$0xff]  ;;  %s267_s2 = sshll.u32 %s447_s5, 4  ;;  %s268_s2 = int_to_ptr.hbm [resolvable:$true] %s267_s2 }
  0x2c   :  { %171 = vmatpush.msra.mxu1 %v88_v56  ;;  %152 = vmatpush.msra.mxu0 %v71_v57  ;;  %v285_v30 = vld [vmem:[%s446_s4] ss:$0 sm:$0xff] }
  0x2d   :  { %212 = vmatpush.msra.mxu3 %v119_v58  ;;  %193 = vmatpush.msra.mxu2 %v102_v60 }
  0x2e   :  { %172 = vmatpush.msra.mxu1 %v87_v59  ;;  %153 = vmatpush.msra.mxu0 %v70_v61 }
  0x2f   :  { %194 = vmatmul.f32.vlgmr.msra.gmra.mxu2 %v68_v62  ;;  %213 = vmatpush.msra.mxu3 %v118_v63 }
  0x30   :  { %154 = vmatmul.f32.vlgmr.msra.gmra.mxu0 %v66_v0  ;;  %214 = vmatmul.f32.vlgmr.msra.gmra.mxu3 %v69_v1 }
  0x31   :  { %173 = vmatpush.msra.mxu1 %v86_v2  ;;  %239 = vmatpush.msrb.mxu0 %v234_v3 }
  0x32   :  { %174 = vmatmul.f32.vlgmr.msra.gmra.mxu1 %v67_v4 }
  0x33   :  { %240 = vmatpush.msrb.mxu0 %v233_v5 }
  0x35   :  { %241 = vmatpush.msrb.mxu0 %v232_v6 }
  0x37   :  { %242 = vmatpush.msrb.mxu0 %v231_v7 }
  0x39   :  { %243 = vmatpush.msrb.mxu0 %v230_v8 }
  0x3b   :  { %244 = vmatpush.msrb.mxu0 %v229_v9 }
  0x3d   :  { %245 = vmatpush.msrb.mxu0 %v228_v10 }
  0x3f   :  { %246 = vmatpush.msrb.mxu0 %v227_v11 }
  0x41   :  { %247 = vmatpush.msrb.mxu0 %v226_v12 }
  0x43   :  { %248 = vmatpush.msrb.mxu0 %v225_v13 }
  0x45   :  { %249 = vmatpush.msrb.mxu0 %v224_v14 }
  0x47   :  { %250 = vmatpush.msrb.mxu0 %v223_v15 }
  0x49   :  { %251 = vmatpush.msrb.mxu0 %v222_v16 }
  0x4b   :  { %252 = vmatpush.msrb.mxu0 %v221_v17 }
  0x4d   :  { %253 = vmatpush.msrb.mxu0 %v220_v18 }
  0x4f   :  { %254 = vmatpush.msrb.mxu0 %v219_v19 }
  0xad   :  { %v155_v21 = vpop.f32.mrf.mxu0 }
  0xae   :  { %v156_v22 = vadd.f32 %v284_v20, %v155_v21 }
  0xaf   :  { %v175_v23 = vpop.f32.mrf.mxu1 }
  0xb0   :  { %v176_v24 = vadd.f32 %v175_v23, %v156_v22 }
  0xb2   :  { %v195_v25 = vpop.f32.mrf.mxu2 }
  0xb3   :  { %v196_v26 = vadd.f32 %v195_v25, %v176_v24  ;;  %v215_v27 = vpop.f32.mrf.mxu3 }
  0xb5   :  { %v216_v28 = vadd.f32 %v215_v27, %v196_v26 }
  0xb7   :  { %v218_v29 = vmax.f32 %v216_v28, 0.0 }
  0xb9   :  { %255 = vmatmul.f32.vlgmr.msrb.gmra.mxu0 %v218_v29 }
 0x136   :  { %v256_v31 = vpop.f32.mrf.mxu0 }
 0x137   :  { %v257_v32 = vadd.f32 %v285_v30, %v256_v31 }
 0x139   :  { %259 = vst [vmem:[#allocation8] sm:$0xff] %v257_v32 }
 0x13a   :  { %270 = dma.vmem_to_hbm [thread:$0]  %s266_s12, 128, %s268_s2, [#allocation4]  }
 0x13b   :  { %386 = dma.done.wait [#allocation4], 128  }
 0x13c   :  { %387 = vsyncadd [#allocation4], 4294967168 }
 0x13d   :  { %275 = vsyncpa [#allocation3], 1 }
 0x13e   :  { %276 = vsyncpa [#allocation6], 1 }
 0x13f   :  { %277 = vsyncpa [#allocation4], 1 }

</bundles_post_ra>
